<compile_context>
chip_gen: v7x
topology: tpu7x:2x2x1
jax: 0.10.0
libtpu: 0.0.40
codegen_flags: <defaults>
</compile_context>

<pallas_src>
import functools

import jax
import jax.numpy as jnp
from jax.experimental import pallas as pl
from jax.experimental.pallas import tpu as pltpu

M_MARGIN = 0.01  # self.m in the PyTorch module


def _linear_margin_kernel(x_ref, w_ref, lab_ref, col_ref, o_ref):
    # x_ref:   (TB, Kp)  input, fully resident   OR  (TB, TK) K-tiled fallback
    # w_ref:   (TN, TK)  weight tile, PyTorch [out, in] layout
    # lab_ref: (TB, 1)   int32 labels for this batch tile
    # col_ref: (1, TN)   int32 global class/column ids for this N tile
    # o_ref:   (TB, TN)  fp32 output tile, resident across the K grid axis
    #
    # NOTE: program_id/num_programs only at top level (never inside pl.when).
    k = pl.program_id(2)
    nk = pl.num_programs(2)
    tk = w_ref.shape[1]

    if x_ref.shape[1] == tk:
        # x block already matches this K chunk (K-tiled fallback, or Kt == 1).
        x_blk = x_ref[...]
    else:
        # x fully resident in VMEM: slice out the current K chunk.
        x_blk = x_ref[:, pl.ds(k * tk, tk)]

    # Contract dim 1 of both operands: (TB, TK) x (TN, TK) -> (TB, TN).
    partial = jax.lax.dot_general(
        x_blk, w_ref[...],
        dimension_numbers=(((1,), (1,)), ((), ())),
        preferred_element_type=jnp.float32,
    )

    @pl.when(k == 0)
    def _init():
        o_ref[...] = partial

    @pl.when(k > 0)
    def _accum():
        o_ref[...] += partial

    @pl.when(k == nk - 1)
    def _epilogue():
        acc = o_ref[...]
        is_target = col_ref[...] == lab_ref[...]       # (1,TN) vs (TB,1) -> (TB,TN)
        o_ref[...] = jnp.where(is_target, acc - M_MARGIN, acc)


def _round_up(x, m):
    return ((x + m - 1) // m) * m


def _pad2d(a, rows, cols):
    r, c = a.shape
    if (r, c) == (rows, cols):
        return a
    return jnp.pad(a, ((0, rows - r), (0, cols - c)))


@functools.partial(
    jax.jit,
    static_argnames=("tb", "tn", "tk", "use_bf16_inputs", "x_resident_max_bytes"))
def lbn_linear_forward(x, weight, label, *,
                       tb=1024, tn=1024, tk=2048,
                       use_bf16_inputs=True,
                       x_resident_max_bytes=16 << 20):
    """Pallas equivalent of Linear.forward(input, label)."""
    B, K = x.shape
    N, Kw = weight.shape
    assert K == Kw, "in_features mismatch"

    # Effective tiles: never larger than the (aligned) problem dims.
    tb_eff = min(tb, _round_up(B, 8))
    tn_eff = min(tn, _round_up(N, 128))
    tk_eff = min(tk, _round_up(K, 128))

    Bp = _round_up(B, tb_eff)
    Np = _round_up(N, tn_eff)
    Kp = _round_up(K, tk_eff)

    nt, bt, kt = Np // tn_eff, Bp // tb_eff, Kp // tk_eff

    in_dtype = jnp.bfloat16 if use_bf16_inputs else jnp.float32
    itemsize = jnp.dtype(in_dtype).itemsize

    xp = _pad2d(x.astype(in_dtype), Bp, Kp)
    wp = _pad2d(weight.astype(in_dtype), Np, Kp)
    labp = _pad2d(label.astype(jnp.int32).reshape(-1, 1), Bp, 1)
    colp = jax.lax.broadcasted_iota(jnp.int32, (1, Np), 1)   # global column ids

    # Keep x fully resident in VMEM when it fits (constant block index across
    # j and k => DMA'd once); otherwise stream it K-tile by K-tile.
    x_resident = (2 * tb_eff * Kp * itemsize) <= x_resident_max_bytes
    if x_resident:
        x_spec = pl.BlockSpec((tb_eff, Kp), lambda j, i, k: (i, 0))
        x_buf_bytes = tb_eff * Kp * itemsize
    else:
        x_spec = pl.BlockSpec((tb_eff, tk_eff), lambda j, i, k: (i, k))
        x_buf_bytes = tb_eff * tk_eff * itemsize

    # VMEM footprint: double-buffered x / W / out (+ tiny label & col tiles).
    vmem_need = 2 * (x_buf_bytes
                     + tn_eff * tk_eff * itemsize
                     + tb_eff * tn_eff * 4
                     + tb_eff * 128 * 4
                     + 8 * tn_eff * 4)
    # Cap at 100 MiB (fine on v5e/v6e's 128 MiB); default tiles keep the
    # request well under v7x's 64 MiB per-TensorCore VMEM.
    vmem_limit = int(min(max(vmem_need + (8 << 20), 32 << 20), 100 << 20))

    # Advisory cost estimate reflecting the actual blocking.
    w_bytes = Np * Kp * itemsize * bt
    x_bytes = Bp * Kp * itemsize * (1 if bt == 1 else nt)
    cost = pl.CostEstimate(
        flops=2 * Bp * Np * Kp,
        transcendentals=0,
        bytes_accessed=int(w_bytes + x_bytes + Bp * Np * 4),
    )

    out = pl.pallas_call(
        _linear_margin_kernel,
        out_shape=jax.ShapeDtypeStruct((Bp, Np), jnp.float32),
        grid_spec=pltpu.PrefetchScalarGridSpec(
            num_scalar_prefetch=0,
            # (N-tiles, B-tiles, K-tiles); K is the reduction axis, innermost.
            grid=(nt, bt, kt),
            in_specs=[
                x_spec,                                                   # x
                pl.BlockSpec((tn_eff, tk_eff), lambda j, i, k: (j, k)),   # W
                pl.BlockSpec((tb_eff, 1),      lambda j, i, k: (i, 0)),   # label
                pl.BlockSpec((1, tn_eff),      lambda j, i, k: (0, j)),   # col ids
            ],
            out_specs=pl.BlockSpec((tb_eff, tn_eff), lambda j, i, k: (i, j)),
        ),
        compiler_params=pltpu.CompilerParams(
            dimension_semantics=("parallel", "parallel", "arbitrary"),
            vmem_limit_bytes=vmem_limit,
        ),
        cost_estimate=cost,
    )(xp, wp, labp, colp)

    return out[:B, :N]


def _reference(x, weight, label):
    cosine = x.astype(jnp.float32) @ weight.astype(jnp.float32).T
    one_hot = jax.nn.one_hot(label, weight.shape[0], dtype=jnp.float32)
    return one_hot * (cosine - M_MARGIN) + (1.0 - one_hot) * cosine


if __name__ == "__main__":
    key = jax.random.PRNGKey(0)
    kx, kw, kl = jax.random.split(key, 3)

    # --- Test 1: module-like small shapes, exact fp32 path (single tile) ---
    batch, in_features, out_features = 8, 32, 128
    x = jax.random.normal(kx, (batch, in_features), dtype=jnp.float32)
    weight = jax.random.normal(kw, (out_features, in_features),
                               dtype=jnp.float32) * 0.05
    label = jax.random.randint(kl, (batch,), 0, out_features, dtype=jnp.int32)

    ref = _reference(x, weight, label)
    out = jax.block_until_ready(
        lbn_linear_forward(x, weight, label, use_bf16_inputs=False))
    assert out.shape == (batch, out_features)
    assert jnp.allclose(out, ref, atol=1e-4, rtol=1e-4)

    # --- Test 2: default bf16-operand path (fp32 accumulate + fp32 margin) ---
    out_bf16 = jax.block_until_ready(lbn_linear_forward(x, weight, label))
    assert jnp.allclose(out_bf16, ref, atol=3e-2, rtol=3e-2)

    # --- Test 3: multi-tile grid (padding on every axis, Kt=2, Bt=2, Nt=3),
    #     fp32, x resident in VMEM and sliced per K chunk in-kernel ---
    kx2, kw2, kl2 = jax.random.split(jax.random.PRNGKey(1), 3)
    b2, k2, n2 = 13, 200, 300   # all non-aligned -> exercises padding
    x2 = jax.random.normal(kx2, (b2, k2), dtype=jnp.float32)
    w2 = jax.random.normal(kw2, (n2, k2), dtype=jnp.float32) * 0.05
    l2 = jax.random.randint(kl2, (b2,), 0, n2, dtype=jnp.int32)
    ref2 = _reference(x2, w2, l2)

    out2 = jax.block_until_ready(
        lbn_linear_forward(x2, w2, l2, tb=8, tn=128, tk=128,
                           use_bf16_inputs=False))
    assert out2.shape == (b2, n2)
    assert jnp.allclose(out2, ref2, atol=1e-4, rtol=1e-4)

    # --- Test 4: same problem, force the K-tiled (non-resident x) fallback ---
    out3 = jax.block_until_ready(
        lbn_linear_forward(x2, w2, l2, tb=8, tn=128, tk=128,
                           use_bf16_inputs=False, x_resident_max_bytes=0))
    assert jnp.allclose(out3, ref2, atol=1e-4, rtol=1e-4)

    print("KERNEL_OK")
</pallas_src>

<mosaic_0001>
module attributes {stable_mosaic.version = 11 : i64} {
  func.func @_linear_margin_kernel(%arg0: i32, %arg1: i32, %arg2: i32, %arg3: memref<8x128xf32, #tpu.memory_space<vmem>>, %arg4: memref<128x128xf32, #tpu.memory_space<vmem>>, %arg5: memref<8x1xi32, #tpu.memory_space<vmem>>, %arg6: memref<1x128xi32, #tpu.memory_space<vmem>>, %arg7: memref<8x128xf32, #tpu.memory_space<vmem>>) attributes {dimension_semantics = [#tpu.dimension_semantics<parallel>, #tpu.dimension_semantics<parallel>, #tpu.dimension_semantics<arbitrary>], iteration_bounds = array<i64: 1, 1, 1>, scalar_prefetch = 0 : i64, scratch_operands = 0 : i64, tpu.core_type = #tpu.core_type<tc>, window_params = [{transform_indices = @transform_0, window_bounds = array<i64: 8, 128>}, {transform_indices = @transform_1, window_bounds = array<i64: 128, 128>}, {transform_indices = @transform_2, window_bounds = array<i64: 8, 1>}, {transform_indices = @transform_3, window_bounds = array<i64: 1, 128>}, {transform_indices = @transform_4, window_bounds = array<i64: 8, 128>}]} {
    %c0 = arith.constant 0 : index
    %c0_0 = arith.constant 0 : index
    %0 = vector.load %arg3[%c0, %c0_0] : memref<8x128xf32, #tpu.memory_space<vmem>>, vector<8x128xf32>
    %c0_1 = arith.constant 0 : index
    %c0_2 = arith.constant 0 : index
    %1 = vector.load %arg4[%c0_1, %c0_2] : memref<128x128xf32, #tpu.memory_space<vmem>>, vector<128x128xf32>
    %cst = arith.constant dense<0.000000e+00> : vector<8x128xf32>
    %2 = tpu.matmul %0, %1, %cst {dimension_numbers = #tpu.dot_dimension_numbers<[1], [1], [0], [0], [0, 0, 1, 0], [], []>} : vector<8x128xf32>, vector<128x128xf32>, vector<8x128xf32> -> vector<8x128xf32>
    %c0_i32 = arith.constant 0 : i32
    %3 = arith.cmpi eq, %arg2, %c0_i32 : i32
    %4 = arith.extui %3 : i1 to i32
    %c0_i32_3 = arith.constant 0 : i32
    %5 = arith.cmpi ne, %4, %c0_i32_3 : i32
    scf.if %5 {
      %c0_8 = arith.constant 0 : index
      %c0_9 = arith.constant 0 : index
      %12 = vector.load %arg7[%c0_8, %c0_9] : memref<8x128xf32, #tpu.memory_space<vmem>>, vector<8x128xf32>
      tpu.vector_store %arg7[%c0_8, %c0_9], %2 {strides = array<i32>} : memref<8x128xf32, #tpu.memory_space<vmem>>, vector<8x128xf32>,
    } else {
    }
    %c0_i32_4 = arith.constant 0 : i32
    %6 = arith.cmpi sgt, %arg2, %c0_i32_4 : i32
    %7 = arith.extui %6 : i1 to i32
    %c0_i32_5 = arith.constant 0 : i32
    %8 = arith.cmpi ne, %7, %c0_i32_5 : i32
    scf.if %8 {
      %c0_8 = arith.constant 0 : index
      %c0_9 = arith.constant 0 : index
      %12 = vector.load %arg7[%c0_8, %c0_9] : memref<8x128xf32, #tpu.memory_space<vmem>>, vector<8x128xf32>
      %13 = arith.addf %12, %2 : vector<8x128xf32>
      %c0_10 = arith.constant 0 : index
      %c0_11 = arith.constant 0 : index
      %14 = vector.load %arg7[%c0_10, %c0_11] : memref<8x128xf32, #tpu.memory_space<vmem>>, vector<8x128xf32>
      tpu.vector_store %arg7[%c0_10, %c0_11], %13 {strides = array<i32>} : memref<8x128xf32, #tpu.memory_space<vmem>>, vector<8x128xf32>,
    } else {
    }
    %c0_i32_6 = arith.constant 0 : i32
    %9 = arith.cmpi eq, %arg2, %c0_i32_6 : i32
    %10 = arith.extui %9 : i1 to i32
    %c0_i32_7 = arith.constant 0 : i32
    %11 = arith.cmpi ne, %10, %c0_i32_7 : i32
    scf.if %11 {
      %c0_8 = arith.constant 0 : index
      %c0_9 = arith.constant 0 : index
      %12 = vector.load %arg7[%c0_8, %c0_9] : memref<8x128xf32, #tpu.memory_space<vmem>>, vector<8x128xf32>
      %c0_10 = arith.constant 0 : index
      %c0_11 = arith.constant 0 : index
      %13 = vector.load %arg6[%c0_10, %c0_11] : memref<1x128xi32, #tpu.memory_space<vmem>>, vector<1x128xi32>
      %c0_12 = arith.constant 0 : index
      %c0_13 = arith.constant 0 : index
      %14 = vector.load %arg5[%c0_12, %c0_13] : memref<8x1xi32, #tpu.memory_space<vmem>>, vector<8x1xi32>
      %15 = vector.broadcast %13 : vector<1x128xi32> to vector<8x128xi32>
      %16 = vector.broadcast %14 : vector<8x1xi32> to vector<8x128xi32>
      %17 = arith.cmpi eq, %15, %16 : vector<8x128xi32>
      %cst_14 = arith.constant 0.00999999977 : f32
      %18 = vector.broadcast %cst_14 : f32 to vector<8x128xf32>
      %19 = arith.subf %12, %18 : vector<8x128xf32>
      %20 = arith.select %17, %19, %12 : vector<8x128xi1>, vector<8x128xf32>
      %c0_15 = arith.constant 0 : index
      %c0_16 = arith.constant 0 : index
      %21 = vector.load %arg7[%c0_15, %c0_16] : memref<8x128xf32, #tpu.memory_space<vmem>>, vector<8x128xf32>
      tpu.vector_store %arg7[%c0_15, %c0_16], %20 {strides = array<i32>} : memref<8x128xf32, #tpu.memory_space<vmem>>, vector<8x128xf32>,
    } else {
    }
    return
  }
  func.func @transform_0(%arg0: i32, %arg1: i32, %arg2: i32) -> (i32, i32) {
    %c0_i32 = arith.constant 0 : i32
    %c0_i32_0 = arith.constant 0 : i32
    return %arg1, %c0_i32 : i32, i32
  }
  func.func @transform_1(%arg0: i32, %arg1: i32, %arg2: i32) -> (i32, i32) {
    %c0_i32 = arith.constant 0 : i32
    return %arg0, %arg2 : i32, i32
  }
  func.func @transform_2(%arg0: i32, %arg1: i32, %arg2: i32) -> (i32, i32) {
    %c0_i32 = arith.constant 0 : i32
    %c0_i32_0 = arith.constant 0 : i32
    return %arg1, %c0_i32 : i32, i32
  }
  func.func @transform_3(%arg0: i32, %arg1: i32, %arg2: i32) -> (i32, i32) {
    %c0_i32 = arith.constant 0 : i32
    %c0_i32_0 = arith.constant 0 : i32
    return %c0_i32, %arg0 : i32, i32
  }
  func.func @transform_4(%arg0: i32, %arg1: i32, %arg2: i32) -> (i32, i32) {
    %c0_i32 = arith.constant 0 : i32
    return %arg1, %arg0 : i32, i32
  }
}

</mosaic_0001>

<bundles_post_ra>
// kernel: lbn_linear_forward.1
= control target key start
LH: loop header
LB: loop body
LE: loop exit
PB: predicated region body
PF: predicated region fallthrough
CT: control target
= control target key end

     0   :  { %v256_v2 = vmov 0.0|0.0   ;;  %vm257_vm0 = vmmov 0   ;;  %v258_v4 = vmov 0.0   ;;  %v259_v5 = vmov 0   ;;  %s355_s0 = inlined_call_operand.vmem [shape: f32[8,128], index: 0, kind: input, shape index: {}]   ;;  %s356_s1 = inlined_call_operand.vmem [shape: f32[128,128], index: 1, kind: input, shape index: {}]   ;;  %s357_s2 = inlined_call_operand.vmem [shape: s32[8,1], index: 2, kind: input, shape index: {}]   ;;  %s358_s3 = inlined_call_operand.vmem [shape: s32[1,128], index: 3, kind: input, shape index: {}]   ;;  %s359_s4 = inlined_call_operand.hbm [shape: f32[8,128], index: 4, kind: output, shape index: {}]  }
   0x1   :  { %v19_v0 = vld [vmem:[%s356_s1] sm:$0xff]  ;;  %v20_v1 = vld [vmem:[%s356_s1 + $0x8] sm:$0xff]  ;;  %202 = vmatprep.subr.bf16.mxu0 %v256_v2  ;;  %199 = vmatprep.mubr.msk.f32.mxu0 %vm257_vm0, %v258_v4  ;;  %v21_v6 = vld [vmem:[%s356_s1 + $0x10] sm:$0xff] }
   0x2   :  { %v203_v3 = vpack.c.bf16 %v20_v1, %v19_v0  ;;  %231 = vset.pattern.permute.xlu0 %v259_v5  ;;  %v22_v7 = vld [vmem:[%s356_s1 + $0x18] sm:$0xff]  ;;  %v122_v8 = vld [vmem:[%s357_s2] sm:$0xff] }
   0x3   :  { %128 = vperm.xlu0 %231, %v122_v8  }
   0x4   :  { %204 = vmatpush3.bf16.xpose.msra.mxu0 %v203_v3 }
   0x5   :  { %205 = vmatprep.subr.bf16.mxu0 %v256_v2 }
   0x6   :  { %9 = vsyncpa [#allocation3], 0  ;;  %v206_v9 = vpack.c.bf16 %v22_v7, %v21_v6  ;;  %v23_v10 = vld [vmem:[%s356_s1 + $0x20] sm:$0xff]  ;;  %v24_v11 = vld [vmem:[%s356_s1 + $0x28] sm:$0xff]  ;;  %s260_s26 = smov [#allocation2]  }
   0x7   :  { %v209_v12 = vpack.c.bf16 %v24_v11, %v23_v10  ;;  %v25_v13 = vld [vmem:[%s356_s1 + $0x30] sm:$0xff]  ;;  %v26_v14 = vld [vmem:[%s356_s1 + $0x38] sm:$0xff]  ;;  %v27_v16 = vld [vmem:[%s356_s1 + $0x40] sm:$0xff]  ;;  %s140_s27 = sshll.u32 %s260_s26, 4  ;;  %s141_s27 = int_to_ptr.vmem [resolvable:$true] %s140_s27 }
   0x8   :  { %v212_v15 = vpack.c.bf16 %v26_v14, %v25_v13  ;;  %v28_v17 = vld [vmem:[%s356_s1 + $0x48] sm:$0xff]  ;;  %v29_v19 = vld [vmem:[%s356_s1 + $0x50] sm:$0xff]  ;;  %v30_v20 = vld [vmem:[%s356_s1 + $0x58] sm:$0xff]  ;;  %p237_p1 = scmp.lt.s32.totalorder %s141_s27, %s141_s27 }
   0x9   :  { %v215_v18 = vpack.c.bf16 %v28_v17, %v27_v16  ;;  %v218_v21 = vpack.c.bf16 %v30_v20, %v29_v19  ;;  %v31_v22 = vld [vmem:[%s356_s1 + $0x60] sm:$0xff]  ;;  %v32_v23 = vld [vmem:[%s356_s1 + $0x68] sm:$0xff]  ;;  %v33_v25 = vld [vmem:[%s356_s1 + $0x70] sm:$0xff] }
   0xa   :  { %v221_v24 = vpack.c.bf16 %v32_v23, %v31_v22  ;;  %v34_v26 = vld [vmem:[%s356_s1 + $0x78] sm:$0xff]  ;;  %v18_v28 = vld [vmem:[%s355_s0] sm:$0xff]  ;;  %s232_s1 = scalar_lea.vmem %s141_s27, 128 }
   0xb   :  { %v224_v27 = vpack.c.bf16 %v34_v26, %v33_v25  ;;  %v148_v30 = vld [vmem:[%s358_s3] ss:$0 sm:$0xff]  ;;  %p233_p0 = scmp.ne.s32.totalorder %s141_s27, %s232_s1  ;;  %p238_p2 = scmp.lt.s32.totalorder %s232_s1, %s232_s1 }
   0xc   :  { %207 = vmatpush3.bf16.xpose.msra.mxu0 %v206_v9 }
   0xd   :  { %208 = vmatprep.subr.bf16.mxu0 %v256_v2  ;;  %p239_p3 = por %p238_p2, %p237_p1 }
   0xf   :  { %p240_p4 = pnand %p239_p3, %p233_p0 }
  0x14   :  { %210 = vmatpush3.bf16.xpose.msra.mxu0 %v209_v12 }
  0x15   :  { %211 = vmatprep.subr.bf16.mxu0 %v256_v2 }
  0x1c   :  { %213 = vmatpush3.bf16.xpose.msra.mxu0 %v212_v15 }
  0x1d   :  { %214 = vmatprep.subr.bf16.mxu0 %v256_v2 }
  0x24   :  { %216 = vmatpush3.bf16.xpose.msra.mxu0 %v215_v18 }
  0x25   :  { %217 = vmatprep.subr.bf16.mxu0 %v256_v2 }
  0x2c   :  { %219 = vmatpush3.bf16.xpose.msra.mxu0 %v218_v21 }
  0x2d   :  { %220 = vmatprep.subr.bf16.mxu0 %v256_v2 }
  0x34   :  { %222 = vmatpush3.bf16.xpose.msra.mxu0 %v221_v24 }
  0x35   :  { %223 = vmatprep.subr.bf16.mxu0 %v256_v2 }
  0x3c   :  { %225 = vmatpush3.bf16.xpose.msra.mxu0 %v224_v27 }
  0x43   :  { %200 = vmatmul.mubr.f32.vlgmr.msra.gmra.mrb[0].mxu0 %v18_v28 }
  0x82   :  { %v129_v29 = vpop.permute.xlu0 %128 }
  0x83   :  { %vm130_vm1 = vcmp.eq.s32.totalorder %v148_v30, %v129_v29 }
 0x116   :  { %v101_v31 = vpop.f32.mrb[0].mxu0 }
 0x117   :  { %v201_v32 = vpop.f32.mrb[1].mxu0  ;;  %v149_v33 = vadd.f32 -0.01, %v101_v31 }
 0x119   :  { %v132_v34 = vsel %vm130_vm1, %v149_v33, %v101_v31 }
 0x11a   :  { %133 = vst [vmem:[#allocation2] sm:$0xff] %v132_v34 }
 0x11b   :  { %243 = shalt.err (!%p240_p4)
}
 0x11c   :  { %s244_s3 = scalar_lea.hbm %s359_s4, 128 }
 0x11d   :  { %p245_p5 = scmp.ne.s32.totalorder %s359_s4, %s244_s3  ;;  %p248_p6 = scmp.lt.u32.totalorder %s244_s3, %s359_s4 }
 0x11f   :  { %p250_p7 = pnand %p248_p6, %p245_p5 }
 0x121   :  { %253 = shalt.err (!%p250_p7)
}
 0x122   :  { %143 = dma.vmem_to_hbm [thread:$0]  %s141_s27, 128, %s359_s4, [#allocation3]  }
 0x123   :  { %254 = dma.done.wait [#allocation3], 128  }
 0x124   :  { %255 = vsyncadd [#allocation3], 4294967168 }
 0x125   :  { %147 = vsyncpa [#allocation3], 1 }

</bundles_post_ra>
